<compile_context>
chip_gen: v7x
topology: tpu7x:2x2x1
jax: 0.10.0
libtpu: 0.0.40
codegen_flags: <defaults>
</compile_context>

<pallas_src>
import jax
import jax.numpy as jnp
from jax.experimental import pallas as pl
from jax.experimental.pallas import tpu as pltpu


def _round_up(x, m):
    return (x + m - 1) // m * m


# ---------------------------------------------------------------------------
# Kernel: o = sigmoid(x @ w1 + b1) @ w2 + b2   (dropout = identity in eval)
# ---------------------------------------------------------------------------
def fcnet_kernel(x_ref, w1_ref, b1_ref, w2_ref, b2_ref, o_ref):
    # Cast x to the MXU operand dtype in VMEM (no extra HBM traffic).
    x = x_ref[...].astype(w1_ref.dtype)
    # Layer 1: Linear (MXU) + bias + Sigmoid; accumulate + activate in f32.
    h = jnp.dot(x, w1_ref[...], preferred_element_type=jnp.float32)
    h = jax.nn.sigmoid(h + b1_ref[...])          # f32 sigmoid (v5e EUP has no bf16)
    # Dropout(p=0.1) is identity in eval mode.
    # Layer 2: Linear (out_activation='linear' -> no nonlinearity).
    h = h.astype(w2_ref.dtype)                   # downcast only AFTER the sigmoid
    y = jnp.dot(h, w2_ref[...], preferred_element_type=jnp.float32)
    o_ref[...] = (y + b2_ref[...]).astype(o_ref.dtype)


# ---------------------------------------------------------------------------
# One-time parameter prep (hoisted out of the forward pass).
# ---------------------------------------------------------------------------
def prepare_fcnet_params(w1, b1, w2, b2, *, matmul_dtype=jnp.bfloat16):
    """Zero-pad the hidden axis to a 128-lane multiple and cast the weight
    matrices to the MXU operand dtype.  Biases stay f32 (added on the f32
    accumulator).  Padded hidden units evaluate to sigmoid(0)=0.5 but the
    corresponding rows of w2 are exactly zero, so they contribute nothing.
    in_dim (w1 rows) and out_dim (w2 cols / b2) are NOT padded: the kernel
    contracts against unpadded x and stores a lane-masked (B, out_dim) output.
    """
    in_dim, hidden = w1.shape
    out_dim = w2.shape[1]
    hid_p = _round_up(hidden, 128)
    w1_p = jnp.pad(w1, ((0, 0), (0, hid_p - hidden))).astype(matmul_dtype)
    b1_p = jnp.pad(b1.reshape(1, hidden),
                   ((0, 0), (0, hid_p - hidden))).astype(jnp.float32)
    w2_p = jnp.pad(w2, ((0, hid_p - hidden), (0, 0))).astype(matmul_dtype)
    b2_p = b2.reshape(1, out_dim).astype(jnp.float32)
    return w1_p, b1_p, w2_p, b2_p


def _choose_batch_block(batch, in_dim, itemsize,
                        target_bytes=1 << 20, max_block=4096):
    """Pick a batch tile that moves ~1 MiB of x per grid step (HBM roofline
    needs >=0.5-1 MiB tiles), rounded to 8 sublanes, and keep the number of
    grid steps even so v7x's two TensorCores both get rows."""
    rows = max(64, target_bytes // max(1, in_dim * itemsize))
    block = min(_round_up(rows, 8), max_block)
    if batch <= block:
        return block                       # caller takes the single-shot path
    steps = pl.cdiv(batch, block)
    if steps > 1 and steps % 2 == 1:       # v7x: even row split across 2 TCs
        steps += 1
        block = _round_up(pl.cdiv(batch, steps), 8)
    return block


# ---------------------------------------------------------------------------
# Forward pass.
# ---------------------------------------------------------------------------
def fcnet_forward(x, params, *, batch_block=None):
    """FCNet eval forward: sigmoid(flatten(x) @ w1 + b1) @ w2 + b2.

    x: (B, C, H, W) or (B, in_dim).  params: output of prepare_fcnet_params
    (weights pre-padded along hidden and pre-cast to the MXU dtype).
    Returns (B, out_dim) f32.
    """
    w1_p, b1_p, w2_p, b2_p = params
    in_dim, hid_p = w1_p.shape
    out_dim = w2_p.shape[1]
    B = x.shape[0]

    # nn.Flatten(): metadata-only reshape for a contiguous NCHW input.
    x2 = x.reshape(B, in_dim)
    itemsize = x2.dtype.itemsize

    if batch_block is None:
        batch_block = _choose_batch_block(B, in_dim, itemsize)
    use_grid = B > batch_block

    # Advisory cost for XLA scheduling of the custom call.
    cost = pl.CostEstimate(
        flops=int(2 * B * (in_dim * hid_p + hid_p * out_dim)),
        transcendentals=int(B * hid_p),
        bytes_accessed=int(x2.size * itemsize
                           + w1_p.size * w1_p.dtype.itemsize
                           + w2_p.size * w2_p.dtype.itemsize
                           + (b1_p.size + b2_p.size) * 4
                           + B * out_dim * 4))

    out_shape = jax.ShapeDtypeStruct((B, out_dim), jnp.float32)

    if not use_grid:
        # Single-shot: no grid -> no per-step pipeline overhead, no
        # double-buffering of operands that are read exactly once.
        return pl.pallas_call(
            fcnet_kernel,
            out_shape=out_shape,
            in_specs=[pl.BlockSpec(memory_space=pltpu.MemorySpace.VMEM)] * 5,
            out_specs=pl.BlockSpec(memory_space=pltpu.MemorySpace.VMEM),
            cost_estimate=cost,
        )(x2, w1_p, b1_p, w2_p, b2_p)

    # Batch-tiled path: weights resident across the grid (constant index_map ->
    # re-fetched only when the block index changes; their 2x-buffer VMEM cost
    # is negligible at this hidden size), batch axis "parallel" so v7x's two
    # TensorCores each take a share of rows.  The last block may be ragged:
    # out-of-bounds reads are undefined but confined to rows whose output
    # writes are masked, so no padding of x and no output slice are needed.
    grid = (pl.cdiv(B, batch_block),)
    blk_bytes = batch_block * (in_dim * itemsize + out_dim * 4)
    w_bytes = (w1_p.size * w1_p.dtype.itemsize + w2_p.size * w2_p.dtype.itemsize
               + (b1_p.size + b2_p.size) * 4)
    vmem_limit = int(min(64 << 20,
                         max(32 << 20, 2 * (blk_bytes + w_bytes) + (4 << 20))))

    return pl.pallas_call(
        fcnet_kernel,
        out_shape=out_shape,
        grid_spec=pltpu.PrefetchScalarGridSpec(
            num_scalar_prefetch=0,
            grid=grid,
            in_specs=[
                pl.BlockSpec((batch_block, in_dim), lambda i: (i, 0)),
                pl.BlockSpec((in_dim, hid_p), lambda i: (0, 0)),
                pl.BlockSpec((1, hid_p), lambda i: (0, 0)),
                pl.BlockSpec((hid_p, out_dim), lambda i: (0, 0)),
                pl.BlockSpec((1, out_dim), lambda i: (0, 0)),
            ],
            out_specs=pl.BlockSpec((batch_block, out_dim), lambda i: (i, 0)),
        ),
        compiler_params=pltpu.CompilerParams(
            dimension_semantics=("parallel",),
            vmem_limit_bytes=vmem_limit),
        cost_estimate=cost,
    )(x2, w1_p, b1_p, w2_p, b2_p)


def init_linear_params(key, fan_in, fan_out):
    """Deterministic init mimicking nn.Linear's uniform(-1/sqrt(fan_in), ...)."""
    kw, kb = jax.random.split(key)
    bound = 1.0 / jnp.sqrt(fan_in)
    w = jax.random.uniform(kw, (fan_in, fan_out), jnp.float32, -bound, bound)
    b = jax.random.uniform(kb, (fan_out,), jnp.float32, -bound, bound)
    return w, b


if __name__ == "__main__":
    # Small shapes consistent with FCNet(enc_dec=1): NCHW input flattened.
    B, C, H, W = 2, 4, 4, 4          # in_dim = 4*4*4 = 64
    in_dim = C * H * W
    hidden = 50                      # default l_hidden=(50,)
    out_dim = 32

    key = jax.random.PRNGKey(0)
    kx, k1, k2, kx2 = jax.random.split(key, 4)

    x = jax.random.normal(kx, (B, C, H, W), jnp.float32)
    w1, b1 = init_linear_params(k1, in_dim, hidden)
    w2, b2 = init_linear_params(k2, hidden, out_dim)

    # Pure-JAX reference (eval-mode dropout = identity, out_activation=linear).
    ref = jax.nn.sigmoid(x.reshape(B, in_dim) @ w1 + b1) @ w2 + b2

    # f32 operand path: matches the PyTorch forward numerics.
    params_f32 = prepare_fcnet_params(w1, b1, w2, b2, matmul_dtype=jnp.float32)
    out = jax.block_until_ready(fcnet_forward(x, params_f32))
    assert out.shape == (B, out_dim)
    assert jnp.allclose(out, ref, atol=1e-5, rtol=1e-5)

    # Default bf16 operand path (MXU-native on v5e/v6e/v7x); f32 accumulate +
    # f32 sigmoid in-kernel.
    params_bf16 = prepare_fcnet_params(w1, b1, w2, b2)
    out_bf16 = jax.block_until_ready(fcnet_forward(x, params_bf16))
    assert out_bf16.shape == (B, out_dim)
    assert jnp.allclose(out_bf16, ref, atol=1e-1, rtol=1e-1)

    # Larger batch: exercises the batch-tiled path, including a ragged last
    # block (300 = 2*128 + 44) with masked output writes and no padding of x.
    B2 = 300
    x_big = jax.random.normal(kx2, (B2, C, H, W), jnp.float32)
    ref_big = jax.nn.sigmoid(x_big.reshape(B2, in_dim) @ w1 + b1) @ w2 + b2
    out_big = jax.block_until_ready(
        fcnet_forward(x_big, params_f32, batch_block=128))
    assert out_big.shape == (B2, out_dim)
    assert jnp.allclose(out_big, ref_big, atol=1e-5, rtol=1e-5)

    print("KERNEL_OK")
</pallas_src>

<mosaic_0001>
module attributes {stable_mosaic.version = 11 : i64} {
  func.func @fcnet_kernel(%arg0: memref<2x64xf32, #tpu.memory_space<vmem>>, %arg1: memref<64x128xf32, #tpu.memory_space<vmem>>, %arg2: memref<1x128xf32, #tpu.memory_space<vmem>>, %arg3: memref<128x32xf32, #tpu.memory_space<vmem>>, %arg4: memref<1x32xf32, #tpu.memory_space<vmem>>, %arg5: memref<2x32xf32, #tpu.memory_space<vmem>>) attributes {dimension_semantics = [], scalar_prefetch = 0 : i64, scratch_operands = 0 : i64, tpu.core_type = #tpu.core_type<tc>} {
    %c0 = arith.constant 0 : index
    %c0_0 = arith.constant 0 : index
    %0 = vector.load %arg0[%c0, %c0_0] : memref<2x64xf32, #tpu.memory_space<vmem>>, vector<2x64xf32>
    %c0_1 = arith.constant 0 : index
    %c0_2 = arith.constant 0 : index
    %1 = vector.load %arg1[%c0_1, %c0_2] : memref<64x128xf32, #tpu.memory_space<vmem>>, vector<64x128xf32>
    %cst = arith.constant dense<0.000000e+00> : vector<2x128xf32>
    %2 = tpu.matmul %0, %1, %cst {dimension_numbers = #tpu.dot_dimension_numbers<[1], [0], [0], [1], [0, 0, 1, 1], [], []>} : vector<2x64xf32>, vector<64x128xf32>, vector<2x128xf32> -> vector<2x128xf32>
    %c0_3 = arith.constant 0 : index
    %c0_4 = arith.constant 0 : index
    %3 = vector.load %arg2[%c0_3, %c0_4] : memref<1x128xf32, #tpu.memory_space<vmem>>, vector<1x128xf32>
    %4 = vector.broadcast %3 : vector<1x128xf32> to vector<2x128xf32>
    %5 = arith.addf %2, %4 : vector<2x128xf32>
    %6 = arith.negf %5 : vector<2x128xf32>
    %7 = math.exp %6 : vector<2x128xf32>
    %cst_5 = arith.constant 1.000000e+00 : f32
    %8 = vector.broadcast %cst_5 : f32 to vector<2x128xf32>
    %9 = arith.addf %8, %7 : vector<2x128xf32>
    %10 = arith.divf %8, %9 : vector<2x128xf32>
    %c0_6 = arith.constant 0 : index
    %c0_7 = arith.constant 0 : index
    %11 = vector.load %arg3[%c0_6, %c0_7] : memref<128x32xf32, #tpu.memory_space<vmem>>, vector<128x32xf32>
    %cst_8 = arith.constant dense<0.000000e+00> : vector<2x32xf32>
    %12 = tpu.matmul %10, %11, %cst_8 {dimension_numbers = #tpu.dot_dimension_numbers<[1], [0], [0], [1], [0, 0, 1, 1], [], []>} : vector<2x128xf32>, vector<128x32xf32>, vector<2x32xf32> -> vector<2x32xf32>
    %c0_9 = arith.constant 0 : index
    %c0_10 = arith.constant 0 : index
    %13 = vector.load %arg4[%c0_9, %c0_10] : memref<1x32xf32, #tpu.memory_space<vmem>>, vector<1x32xf32>
    %14 = vector.broadcast %13 : vector<1x32xf32> to vector<2x32xf32>
    %15 = arith.addf %12, %14 : vector<2x32xf32>
    %c0_11 = arith.constant 0 : index
    %c0_12 = arith.constant 0 : index
    %16 = vector.load %arg5[%c0_11, %c0_12] : memref<2x32xf32, #tpu.memory_space<vmem>>, vector<2x32xf32>
    tpu.vector_store %arg5[%c0_11, %c0_12], %15 {strides = array<i32>} : memref<2x32xf32, #tpu.memory_space<vmem>>, vector<2x32xf32>,
    return
  }
}

</mosaic_0001>

<bundles_post_ra>
// kernel: tpu_custom_call.1
= control target key start
LH: loop header
LB: loop body
LE: loop exit
PB: predicated region body
PF: predicated region fallthrough
CT: control target
= control target key end

     0   :  { %v378_v3 = vmov 0.0|0.0   ;;  %vm379_vm0 = vmmov 0   ;;  %v380_v6 = vmov 0.0   ;;  %s517_s0 = inlined_call_operand.vmem [shape: f32[2,64], index: 0, kind: input, shape index: {}]   ;;  %s518_s1 = inlined_call_operand.vmem [shape: f32[64,128], index: 1, kind: input, shape index: {}]   ;;  %s519_s2 = inlined_call_operand.vmem [shape: f32[1,128], index: 2, kind: input, shape index: {}]   ;;  %s520_s3 = inlined_call_operand.vmem [shape: f32[128,32], index: 3, kind: input, shape index: {}]   ;;  %s521_s4 = inlined_call_operand.vmem [shape: f32[1,32], index: 4, kind: input, shape index: {}]   ;;  %s522_s5 = inlined_call_operand.hbm [shape: f32[2,32], index: 5, kind: output, shape index: {}]  }
   0x1   :  { %v22_v0 = vld [vmem:[%s518_s1] sm:$0xff]  ;;  %v23_v1 = vld [vmem:[%s518_s1 + $0x8] sm:$0xff]  ;;  %v24_v2 = vld [vmem:[%s518_s1 + $0x10] sm:$0xff]  ;;  %310 = vmatprep.subr.bf16.mxu0 %v378_v3  ;;  %272 = vmatprep.mubr.msk.f32.mxu0 %vm379_vm0, %v380_v6 }
   0x2   :  { %v311_v4 = vpack.c.bf16 %v23_v1, %v22_v0  ;;  %v25_v5 = vld [vmem:[%s518_s1 + $0x18] sm:$0xff]  ;;  %322 = vmatprep.subr.bf16.mxu1 %v378_v3  ;;  %307 = vmatprep.mubr.msk.f32.mxu1 %vm379_vm0, %v380_v6  ;;  %v117_v8 = vld [vmem:[%s520_s3] sm:$0xff]  ;;  %v118_v9 = vld [vmem:[%s520_s3 + $0x8] sm:$0xff] }
   0x3   :  { %v314_v7 = vpack.c.bf16 %v25_v5, %v24_v2  ;;  %v26_v10 = vld [vmem:[%s518_s1 + $0x20] sm:$0xff]  ;;  %v27_v11 = vld [vmem:[%s518_s1 + $0x28] sm:$0xff]  ;;  %v323_v12 = vpack.c.bf16 %v118_v9, %v117_v8 }
   0x4   :  { %312 = vmatpush3.bf16.msra.mxu0 %v311_v4 }
   0x5   :  { %313 = vmatprep.subr.bf16.mxu0 %v378_v3 }
   0x6   :  { %10 = vsyncpa [#allocation3], 0  ;;  %324 = vmatpush3.bf16.msra.mxu1 %v323_v12  ;;  %v317_v13 = vpack.c.bf16 %v27_v11, %v26_v10  ;;  %v28_v14 = vld [vmem:[%s518_s1 + $0x30] sm:$0xff]  ;;  %v29_v15 = vld [vmem:[%s518_s1 + $0x38] sm:$0xff]  ;;  %vm37_vm1 = vcmask 523264   ;;  %s381_s1 = smov [#allocation2]  }
   0x7   :  { %325 = vmatprep.subr.bf16.mxu1 %v378_v3  ;;  %v320_v16 = vpack.c.bf16 %v29_v15, %v28_v14  ;;  %v21_v17 = vld [vmem:[%s517_s0] sm:$0x3]  ;;  %v119_v18 = vld [vmem:[%s520_s3 + $0x10] sm:$0xff]  ;;  %v120_v19 = vld [vmem:[%s520_s3 + $0x18] sm:$0xff]  ;;  %s218_s19 = sshll.u32 %s381_s1, 4  ;;  %vm210_vm2 = vcmask 254976   ;;  %s219_s19 = int_to_ptr.vmem [resolvable:$true] %s218_s19 }
   0x8   :  { %315 = vmatpush3.bf16.msra.mxu0 %v314_v7  ;;  %v326_v20 = vpack.c.bf16 %v120_v19, %v119_v18  ;;  %v121_v21 = vld [vmem:[%s520_s3 + $0x20] sm:$0xff]  ;;  %v122_v22 = vld [vmem:[%s520_s3 + $0x28] sm:$0xff]  ;;  %v123_v24 = vld [vmem:[%s520_s3 + $0x30] sm:$0xff]  ;;  %p359_p1 = scmp.lt.s32.totalorder %s219_s19, %s219_s19 }
   0x9   :  { %316 = vmatprep.subr.bf16.mxu0 %v378_v3  ;;  %v329_v23 = vpack.c.bf16 %v122_v22, %v121_v21  ;;  %v124_v25 = vld [vmem:[%s520_s3 + $0x38] sm:$0xff]  ;;  %v125_v27 = vld [vmem:[%s520_s3 + $0x40] sm:$0xff]  ;;  %v126_v28 = vld [vmem:[%s520_s3 + $0x48] sm:$0xff] }
   0xa   :  { %327 = vmatpush3.bf16.msra.mxu1 %v326_v20  ;;  %v332_v26 = vpack.c.bf16 %v124_v25, %v123_v24  ;;  %v335_v29 = vpack.c.bf16 %v126_v28, %v125_v27  ;;  %v127_v30 = vld [vmem:[%s520_s3 + $0x50] sm:$0xff]  ;;  %v128_v31 = vld [vmem:[%s520_s3 + $0x58] sm:$0xff]  ;;  %v129_v33 = vld [vmem:[%s520_s3 + $0x60] sm:$0xff] }
   0xb   :  { %328 = vmatprep.subr.bf16.mxu1 %v378_v3  ;;  %v338_v32 = vpack.c.bf16 %v128_v31, %v127_v30  ;;  %v130_v34 = vld [vmem:[%s520_s3 + $0x68] sm:$0xff]  ;;  %v131_v36 = vld [vmem:[%s520_s3 + $0x70] sm:$0xff]  ;;  %v132_v37 = vld [vmem:[%s520_s3 + $0x78] sm:$0xff] }
   0xc   :  { %318 = vmatpush3.bf16.msra.mxu0 %v317_v13  ;;  %v341_v35 = vpack.c.bf16 %v130_v34, %v129_v33  ;;  %v344_v38 = vpack.c.bf16 %v132_v37, %v131_v36  ;;  %v226_v39 = vld [vmem:[%s519_s2] ss:$0 sm:$0xff]  ;;  %s354_s2 = scalar_lea.vmem %s219_s19, 32 }
   0xd   :  { %319 = vmatprep.subr.bf16.mxu0 %v378_v3  ;;  %v229_v47 = vld [vmem:[%s521_s4] ss:$0 sm:$0xff]  ;;  %p355_p0 = scmp.ne.s32.totalorder %s219_s19, %s354_s2  ;;  %p360_p2 = scmp.lt.s32.totalorder %s354_s2, %s354_s2 }
   0xe   :  { %330 = vmatpush3.bf16.msra.mxu1 %v329_v23 }
   0xf   :  { %331 = vmatprep.subr.bf16.mxu1 %v378_v3  ;;  %p361_p3 = por %p360_p2, %p359_p1 }
  0x10   :  { %321 = vmatpush3.bf16.msra.mxu0 %v320_v16 }
  0x11   :  { %p362_p4 = pnand %p361_p3, %p355_p0 }
  0x12   :  { %333 = vmatpush3.bf16.msra.mxu1 %v332_v26 }
  0x13   :  { %273 = vmatmul.mubr.msk.f32.vlgmr.msra.gmra.mrb[0].mxu0 %vm37_vm1, %v21_v17  ;;  %334 = vmatprep.subr.bf16.mxu1 %v378_v3 }
  0x16   :  { %336 = vmatpush3.bf16.msra.mxu1 %v335_v29 }
  0x17   :  { %337 = vmatprep.subr.bf16.mxu1 %v378_v3 }
  0x1a   :  { %339 = vmatpush3.bf16.msra.mxu1 %v338_v32 }
  0x1b   :  { %340 = vmatprep.subr.bf16.mxu1 %v378_v3 }
  0x1e   :  { %342 = vmatpush3.bf16.msra.mxu1 %v341_v35 }
  0x1f   :  { %343 = vmatprep.subr.bf16.mxu1 %v378_v3 }
  0x22   :  { %345 = vmatpush3.bf16.msra.mxu1 %v344_v38 }
  0xe6   :  { %v107_v40 = vpop.f32.mrb[0].mxu0 }
  0xe7   :  { %v108_v41 = vadd.f32 %v226_v39, %v107_v40  ;;  %v274_v42 = vpop.f32.mrb[1].mxu0 }
  0xe9   :  { %v228_v43 = vmul.f32 -1.442695, %v108_v41 }
  0xeb   :  { %350 = vpow2.f32 %v228_v43 }
  0xf5   :  { %v351_v44 = vpop.eup %350 }
  0xf6   :  { %v114_v45 = vadd.f32 1.0, %v351_v44 }
  0xf8   :  { %352 = vrcp.f32 %v114_v45 }
 0x102   :  { %v353_v46 = vpop.eup %352 }
 0x103   :  { %308 = vmatmul.mubr.f32.vlgmr.msra.gmra.mrb[0].mxu1 %v353_v46 }
 0x1d6   :  { %v206_v48 = vpop.f32.mrb[0].mxu1 }
 0x1d7   :  { %v207_v49 = vadd.f32 %v229_v47, %v206_v48  ;;  %v309_v50 = vpop.f32.mrb[1].mxu1 }
 0x1d9   :  { %211 = vst.msk [vmem:[#allocation2] sm:$0x3] %vm210_vm2, %v207_v49 }
 0x1da   :  { %365 = shalt.err (!%p362_p4)
}
 0x1db   :  { %s366_s21 = scalar_lea.hbm %s522_s5, 32 }
 0x1dc   :  { %p367_p5 = scmp.ne.s32.totalorder %s522_s5, %s366_s21  ;;  %p370_p6 = scmp.lt.u32.totalorder %s366_s21, %s522_s5 }
 0x1de   :  { %p372_p7 = pnand %p370_p6, %p367_p5 }
 0x1e0   :  { %375 = shalt.err (!%p372_p7)
}
 0x1e1   :  { %221 = dma.vmem_to_hbm [thread:$0]  %s219_s19, 32, %s522_s5, [#allocation3]  }
 0x1e2   :  { %376 = dma.done.wait [#allocation3], 32  }
 0x1e3   :  { %377 = vsyncadd [#allocation3], 4294967264 }
 0x1e4   :  { %225 = vsyncpa [#allocation3], 1 }

</bundles_post_ra>
